<compile_context>
chip_gen: v7x
topology: tpu7x:2x2x1
jax: 0.10.0
libtpu: 0.0.40
codegen_flags: <defaults>
</compile_context>

<pallas_src>
import functools

import jax
import jax.numpy as jnp
from jax.experimental import pallas as pl
from jax.experimental.pallas import tpu as pltpu


def _round_up(x, m):
    return ((x + m - 1) // m) * m


def _choose_batch_tile(B, A, target_tile_bytes=2 << 20):
    """Pick the lane (batch) tile: multiple of 128, ~target_tile_bytes of f32
    q-values per tile, and >= 2 grid tiles when the batch allows (v7x megacore)."""
    Bp = _round_up(B, 128)
    tb = max(128, (target_tile_bytes // (A * 4)) // 128 * 128)
    tb = min(tb, Bp)
    if Bp >= 256 and Bp // tb < 2:
        tb = _round_up(Bp // 2, 128)
    return tb


def _softmax_body_kernel(x_ref, u_ref, tri_ref, o_ref, *, T):
    """Transposed layout: lanes = batch, sublanes = actions.

    x_ref:   (A, TB)  q-values (transposed)            -- VMEM
    u_ref:   (1, TB)  f32 uniforms in [0, 1), one per row
    tri_ref: (A, A)   bf16 lower-triangular ones (resident constant block)
    o_ref:   (1, TB)  int32 sampled action indices (lane-dense store)
    """
    A = x_ref.shape[0]

    # Scaled, numerically-stable (unnormalized) softmax numerators.
    x = x_ref[...].astype(jnp.float32) * T           # (A, TB)
    m = jnp.max(x, axis=0, keepdims=True)            # (1, TB) per-row max
    e = jnp.exp(x - m)                               # (A, TB), lane-dense EUP work

    # Inclusive prefix sum over the action (sublane) axis on the MXU:
    #   cdf[j, b] = sum_{k <= j} e[k, b]  ==  (tri @ e)[j, b]
    # bf16 operands (native MXU path), f32 accumulate.  ~2^-8 relative
    # perturbation of the sampling probabilities -- acceptable for sampling.
    cdf = jnp.dot(tri_ref[...], e.astype(jnp.bfloat16),
                  preferred_element_type=jnp.float32)   # (A, TB) f32

    # Inverse-CDF sampling against the UNnormalized cdf:
    #   u in [0, 1) -> thresh = u * total, count lanes with cdf < thresh.
    total = cdf[A - 1:A, :]                          # == sum_k e[k, b], (1, TB)
    thresh = u_ref[...] * total                      # (1, TB)

    cnt = jnp.sum((cdf < thresh).astype(jnp.int32), axis=0, keepdims=True)
    # MXU rounding can make cdf non-monotone by ~1 ulp; never emit index A.
    o_ref[...] = jnp.minimum(cnt, A - 1)


def softmax_body(outputs, key, T=1.0):
    """outputs: (B, A) float Q-values; key: jax PRNG key for the multinomial draw.

    Returns (B, 1) int32 sampled actions (one multinomial sample per row)."""
    B, A = outputs.shape

    tb = _choose_batch_tile(B, A)
    Bp = _round_up(B, tb)

    # Layout plumbing (outside the kernel): batch -> lanes.
    x_t = jnp.transpose(outputs)                     # (A, B), lane-dense batch
    if Bp != B:
        x_t = jnp.pad(x_t, ((0, 0), (0, Bp - B)))    # padded columns are discarded

    # Exactly B uniforms (RNG consumption independent of padding).
    u = jax.random.uniform(key, (B,), dtype=jnp.float32)
    if Bp != B:
        u = jnp.pad(u, (0, Bp - B))
    u = u.reshape(1, Bp)

    # Hoisted scan constant: tri[j, k] = 1 if k <= j (lower triangular, bf16).
    tri = (jax.lax.broadcasted_iota(jnp.int32, (A, A), 1)
           <= jax.lax.broadcasted_iota(jnp.int32, (A, A), 0)).astype(jnp.bfloat16)

    kernel = functools.partial(_softmax_body_kernel, T=float(T))

    # VMEM estimate: double-buffered x/u/out tiles + (conservatively 2x) tri.
    vmem_est = 2 * (A * tb * 4) + 2 * (A * A * 2) + 4 * (tb * 4) + (1 << 20)
    cp_kwargs = dict(dimension_semantics=("parallel",))
    if vmem_est > (12 << 20):
        cp_kwargs["vmem_limit_bytes"] = min(vmem_est + (8 << 20), 100 << 20)

    out = pl.pallas_call(
        kernel,
        out_shape=jax.ShapeDtypeStruct((1, Bp), jnp.int32),
        grid=(Bp // tb,),
        in_specs=[
            pl.BlockSpec((A, tb), lambda i: (0, i)),   # q-values (transposed)
            pl.BlockSpec((1, tb), lambda i: (0, i)),   # per-row uniforms
            pl.BlockSpec((A, A), lambda i: (0, 0)),    # tri constant (resident)
        ],
        out_specs=pl.BlockSpec((1, tb), lambda i: (0, i)),  # lane-dense actions
        compiler_params=pltpu.CompilerParams(**cp_kwargs),
    )(x_t, u, tri)

    return out[0, :B].reshape(B, 1)


def _reference_actions(outputs, key, T):
    """Pure-JAX inverse-CDF reference using the same uniforms (f32 throughout)."""
    B, A = outputs.shape
    u = jax.random.uniform(key, (B,), dtype=jnp.float32)
    p = jax.nn.softmax(outputs.astype(jnp.float32) * T, axis=-1)
    cdf = jnp.cumsum(p, axis=-1)
    a = jnp.sum((cdf < u[:, None]).astype(jnp.int32), axis=-1)
    return jnp.minimum(a, A - 1).reshape(B, 1)


if __name__ == "__main__":
    key = jax.random.PRNGKey(0)
    k_q, k_sample, k_q2, k_sample2 = jax.random.split(key, 4)

    # Small DQN-like shape: batch of 8 states, 16 possible actions.
    B, A = 8, 16
    outputs = jax.random.normal(k_q, (B, A), dtype=jnp.float32)
    actions = jax.block_until_ready(softmax_body(outputs, k_sample, T=1.0))

    assert actions.shape == (B, 1)
    assert actions.dtype == jnp.int32
    assert bool(jnp.all((actions >= 0) & (actions < A)))
    ref = _reference_actions(outputs, k_sample, T=1.0)
    # bf16 MXU scan may move a threshold boundary by at most one bucket.
    assert bool(jnp.all(jnp.abs(actions - ref) <= 1))

    # Larger, non-multiple batch: exercises padding and a multi-tile grid.
    B2, A2 = 300, 16
    outputs2 = jax.random.normal(k_q2, (B2, A2), dtype=jnp.float32)
    actions2 = jax.block_until_ready(softmax_body(outputs2, k_sample2, T=0.5))

    assert actions2.shape == (B2, 1)
    assert bool(jnp.all((actions2 >= 0) & (actions2 < A2)))
    ref2 = _reference_actions(outputs2, k_sample2, T=0.5)
    assert bool(jnp.all(jnp.abs(actions2 - ref2) <= 1))

    print("KERNEL_OK")
</pallas_src>

<mosaic_0001>
module attributes {stable_mosaic.version = 11 : i64} {
  func.func @_softmax_body_kernel(%arg0: i32, %arg1: memref<16x128xf32, #tpu.memory_space<vmem>>, %arg2: memref<1x128xf32, #tpu.memory_space<vmem>>, %arg3: memref<16x16xbf16, #tpu.memory_space<vmem>>, %arg4: memref<1x128xi32, #tpu.memory_space<vmem>>) attributes {dimension_semantics = [#tpu.dimension_semantics<parallel>], iteration_bounds = array<i64: 1>, scalar_prefetch = 0 : i64, scratch_operands = 0 : i64, tpu.core_type = #tpu.core_type<tc>, window_params = [{transform_indices = @transform_0, window_bounds = array<i64: 16, 128>}, {transform_indices = @transform_1, window_bounds = array<i64: 1, 128>}, {pipeline_mode = #tpu.pipeline_mode<synchronous>, transform_indices = @transform_2, window_bounds = array<i64: 16, 16>}, {transform_indices = @transform_3, window_bounds = array<i64: 1, 128>}]} {
    %c0 = arith.constant 0 : index
    %c0_0 = arith.constant 0 : index
    %0 = vector.load %arg1[%c0, %c0_0] : memref<16x128xf32, #tpu.memory_space<vmem>>, vector<16x128xf32>
    %cst = arith.constant 1.000000e+00 : f32
    %1 = vector.broadcast %cst : f32 to vector<16x128xf32>
    %2 = arith.mulf %0, %1 : vector<16x128xf32>
    %cst_1 = arith.constant dense<0xFF800000> : vector<128xf32>
    %3 = vector.multi_reduction <maximumf>, %2, %cst_1 [0] : vector<16x128xf32> to vector<128xf32>
    %4 = vector.shape_cast %3 : vector<128xf32> to vector<1x128xf32>
    %5 = vector.broadcast %4 : vector<1x128xf32> to vector<16x128xf32>
    %6 = arith.subf %2, %5 : vector<16x128xf32>
    %7 = math.exp %6 : vector<16x128xf32>
    %c0_2 = arith.constant 0 : index
    %c0_3 = arith.constant 0 : index
    %8 = vector.load %arg3[%c0_2, %c0_3] : memref<16x16xbf16, #tpu.memory_space<vmem>>, vector<16x16xbf16>
    %9 = arith.truncf %7 : vector<16x128xf32> to vector<16x128xbf16>
    %cst_4 = arith.constant dense<0.000000e+00> : vector<16x128xf32>
    %10 = tpu.matmul %8, %9, %cst_4 {dimension_numbers = #tpu.dot_dimension_numbers<[1], [0], [0], [1], [0, 0, 1, 1], [], []>} : vector<16x16xbf16>, vector<16x128xbf16>, vector<16x128xf32> -> vector<16x128xf32>
    %11 = vector.extract_strided_slice %10 {offsets = [15, 0], sizes = [1, 128], strides = [1, 1]} : vector<16x128xf32> to vector<1x128xf32>
    %c0_5 = arith.constant 0 : index
    %c0_6 = arith.constant 0 : index
    %12 = vector.load %arg2[%c0_5, %c0_6] : memref<1x128xf32, #tpu.memory_space<vmem>>, vector<1x128xf32>
    %13 = arith.mulf %12, %11 : vector<1x128xf32>
    %14 = vector.broadcast %13 : vector<1x128xf32> to vector<16x128xf32>
    %15 = arith.cmpf olt, %10, %14 : vector<16x128xf32>
    %16 = arith.extui %15 : vector<16x128xi1> to vector<16x128xi32>
    %cst_7 = arith.constant dense<0> : vector<128xi32>
    %17 = vector.multi_reduction <add>, %16, %cst_7 [0] : vector<16x128xi32> to vector<128xi32>
    %18 = vector.shape_cast %17 : vector<128xi32> to vector<1x128xi32>
    %c15_i32 = arith.constant 15 : i32
    %19 = vector.broadcast %c15_i32 : i32 to vector<1x128xi32>
    %20 = arith.minsi %18, %19 : vector<1x128xi32>
    %c0_8 = arith.constant 0 : index
    %c0_9 = arith.constant 0 : index
    %21 = vector.load %arg4[%c0_8, %c0_9] : memref<1x128xi32, #tpu.memory_space<vmem>>, vector<1x128xi32>
    tpu.vector_store %arg4[%c0_8, %c0_9], %20 {strides = array<i32>} : memref<1x128xi32, #tpu.memory_space<vmem>>, vector<1x128xi32>,
    return
  }
  func.func @transform_0(%arg0: i32) -> (i32, i32) {
    %c0_i32 = arith.constant 0 : i32
    %c0_i32_0 = arith.constant 0 : i32
    return %c0_i32, %arg0 : i32, i32
  }
  func.func @transform_1(%arg0: i32) -> (i32, i32) {
    %c0_i32 = arith.constant 0 : i32
    %c0_i32_0 = arith.constant 0 : i32
    return %c0_i32, %arg0 : i32, i32
  }
  func.func @transform_2(%arg0: i32) -> (i32, i32) {
    %c0_i32 = arith.constant 0 : i32
    %c0_i32_0 = arith.constant 0 : i32
    %c0_i32_1 = arith.constant 0 : i32
    return %c0_i32, %c0_i32_0 : i32, i32
  }
  func.func @transform_3(%arg0: i32) -> (i32, i32) {
    %c0_i32 = arith.constant 0 : i32
    %c0_i32_0 = arith.constant 0 : i32
    return %c0_i32, %arg0 : i32, i32
  }
}

</mosaic_0001>

<bundles_post_ra>
// kernel: tpu_custom_call.1
= control target key start
LH: loop header
LB: loop body
LE: loop exit
PB: predicated region body
PF: predicated region fallthrough
CT: control target
= control target key end

     0   :  { %8 = vsyncpa [#allocation3], 0  ;;  %s337_s0 = inlined_call_operand.hbm [shape: f32[16,128], index: 0, kind: input, shape index: {}]   ;;  %s338_s1 = inlined_call_operand.vmem [shape: f32[1,128], index: 1, kind: input, shape index: {}]   ;;  %s339_s2 = inlined_call_operand.hbm [shape: bf16[16,16], index: 2, kind: input, shape index: {}]   ;;  %s340_s3 = inlined_call_operand.hbm [shape: s32[1,128], index: 3, kind: output, shape index: {}]  }
   0x1   :  { %9 = vsyncpa [#allocation6], 0 }
   0x2   :  { %10 = vsyncpa [#allocation4], 0  ;;  %s267_s12 = smov [#allocation2]   ;;  %s195_s16 = scalar_lea.hbm %s337_s0, 256 }
   0x3   :  { %s16_s13 = sshll.u32 %s267_s12, 4  ;;  %p196_p0 = scmp.ne.s32.totalorder %s337_s0, %s195_s16  ;;  %s17_s13 = int_to_ptr.vmem [resolvable:$true] %s16_s13 }
   0x4   :  { %p199_p1 = scmp.lt.u32.totalorder %s195_s16, %s337_s0 }
   0x6   :  { %p201_p2 = pnand %p199_p1, %p196_p0 }
   0x8   :  { %204 = shalt.err (!%p201_p2)
}
   0x9   :  { %s205_s21 = scalar_lea.vmem %s17_s13, 256  ;;  %p210_p4 = scmp.lt.s32.totalorder %s17_s13, %s17_s13 }
   0xa   :  { %p206_p3 = scmp.ne.s32.totalorder %s17_s13, %s205_s21  ;;  %p211_p5 = scmp.lt.s32.totalorder %s205_s21, %s205_s21 }
   0xc   :  { %p212_p6 = por %p211_p5, %p210_p4 }
   0xe   :  { %p213_p7 = pnand %p212_p6, %p206_p3 }
  0x10   :  { %216 = shalt.err (!%p213_p7)
}
  0x11   :  { %s268_s22 = smov 128   ;;  %s269_s23 = smov 8  }
  0x12   :  { %22 = dma.hbm_to_vmem [thread:$0]  %s337_s0, 256, %s17_s13, [#allocation3], %s268_s22, %s268_s22, %s269_s23  }
  0x13   :  { %s270_s26 = smov [#allocation5]   ;;  %s217_s30 = scalar_lea.hbm %s339_s2, 128 }
  0x14   :  { %s30_s27 = sshll.u32 %s270_s26, 4  ;;  %p218_p8 = scmp.ne.s32.totalorder %s339_s2, %s217_s30  ;;  %s31_s27 = int_to_ptr.vmem [resolvable:$true] %s30_s27 }
  0x15   :  { %p221_p9 = scmp.lt.u32.totalorder %s217_s30, %s339_s2 }
  0x17   :  { %p223_p10 = pnand %p221_p9, %p218_p8 }
  0x19   :  { %226 = shalt.err (!%p223_p10)
}
  0x1a   :  { %s227_s8 = scalar_lea.vmem %s31_s27, 128  ;;  %p232_p12 = scmp.lt.s32.totalorder %s31_s27, %s31_s27 }
  0x1b   :  { %p228_p11 = scmp.ne.s32.totalorder %s31_s27, %s227_s8  ;;  %p233_p13 = scmp.lt.s32.totalorder %s227_s8, %s227_s8 }
  0x1d   :  { %p234_p0 = por %p233_p13, %p232_p12 }
  0x1f   :  { %p235_p1 = pnand %p234_p0, %p228_p11 }
  0x21   :  { %238 = shalt.err (!%p235_p1)
}
  0x22   :  { %s271_s0 = smov 64   ;;  %s272_s9 = smov 4  }
  0x23   :  { %36 = dma.hbm_to_vmem [thread:$0]  %s339_s2, 128, %s31_s27, [#allocation6], %s271_s0, %s271_s0, %s272_s9  }
  0x24   :  { %261 = dma.done.wait [#allocation3], 256  }
  0x25   :  { %262 = vsyncadd [#allocation3], 4294967040 }
  0x26   :  { %263 = dma.done.wait [#allocation6], 128  }
  0x27   :  { %264 = vsyncadd [#allocation6], 4294967168  ;;  %v273_v0 = vmov 0.0   ;;  %vm274_vm0 = vmmov 0   ;;  %v44_v1 = vld [vmem:[#allocation2] sm:$0xff]  ;;  %v45_v2 = vld [vmem:[#allocation2 + $0x8] sm:$0xff]  ;;  %v118_v20 = vlaneseq }
  0x28   :  { %173 = vmatprep.subr.bf16.mxu0 %v273_v0  ;;  %175 = vmatprep.mubr.msk.bf16.mxu0 %vm274_vm0, %v273_v0  ;;  %v46_v3 = vmax.f32 %v44_v1, %v45_v2  ;;  %v190_v17 = vld [vmem:[#allocation5] sm:$0xff]   ;;  %vm67_vm1 = vcmask 130048   ;;  %v275_v18 = vmov 1966171168   ;;  %v112_v32 = vld [vmem:[%s338_s1] sm:$0x1] }
  0x29   :  { %v116_v19 = vunpack.c.l.s4 %v275_v18  ;;  %v119_v22 = vshrl.u32 %v118_v20, 7  ;;  %v276_v37 = vmov 0   ;;  %s277_s13 = smov [#allocation7]  }
  0x2a   :  { %v47_v4 = vrot.slane %v46_v3, 4  ;;  %s159_s14 = sshll.u32 %s277_s13, 4  ;;  %s160_s14 = int_to_ptr.vmem [resolvable:$true] %s159_s14 }
  0x2b   :  { %v117_v21 = vunpack.c.0.s8 %v116_v19  ;;  %v136_v34 = vsub.s32 0, %v119_v22  ;;  %s239_s1 = scalar_lea.vmem %s160_s14, 16  ;;  %s243_s15 = scalar_lea.vmem %s160_s14, 32 }
  0x2c   :  { %v48_v5 = vmax.f32 %v46_v3, %v47_v4  ;;  %p240_p2 = scmp.ne.s32.totalorder %s160_s14, %s239_s1  ;;  %p244_p3 = scmp.lt.s32.totalorder %s160_s14, %s160_s14 }
  0x2d   :  { %v120_v25 = vsub.s32 %v117_v21, %v119_v22  ;;  %p245_p4 = scmp.lt.s32.totalorder %s243_s15, %s239_s1 }
  0x2e   :  { %v49_v6 = vrot.slane %v48_v5, 2 }
  0x2f   :  { %p246_p5 = por %p245_p4, %p244_p3 }
  0x30   :  { %v50_v7 = vmax.f32 %v48_v5, %v49_v6 }
  0x31   :  { %p247_p6 = pnand %p246_p5, %p240_p2 }
  0x32   :  { %v51_v8 = vrot.slane %v50_v7, 1 }
  0x34   :  { %v52_v9 = vmax.f32 %v50_v7, %v51_v8 }
  0x36   :  { %v53_v10 = vsub.f32 %v44_v1, %v52_v9  ;;  %v54_v11 = vsub.f32 %v45_v2, %v52_v9 }
  0x38   :  { %v55_v12 = vmul.f32 1.442695, %v53_v10  ;;  %v57_v13 = vmul.f32 1.442695, %v54_v11 }
  0x3a   :  { %191 = vpow2.f32 %v55_v12 }
  0x3b   :  { %193 = vpow2.f32 %v57_v13 }
  0x44   :  { %v192_v14 = vpop.eup %191 }
  0x45   :  { %v194_v15 = vpop.eup %193 }
  0x46   :  { %v61_v16 = vpack.c.bf16 %v194_v15, %v192_v14 }
  0x48   :  { %174 = vmatpush3.bf16.msra.mxu0 %v61_v16 }
  0x4b   :  { %176 = vmatmul.mubr.msk.bf16.vlgmr.msra.gmra.mrb[0].mxu0 %vm67_vm1, %v190_v17 }
 0x11e   :  { %v105_v23 = vpop.f32.mrb[0].mxu0 }
 0x11f   :  { %v177_v24 = vpop.f32.mrb[1].mxu0 }
 0x120   :  { %v108_v26 = vpop.f32.mrb[2].mxu0 }
 0x121   :  { %v114_v27 = vcombine.high %v108_v26, %v108_v26  ;;  %v178_v28 = vpop.f32.mrb[3].mxu0 }
 0x123   :  { %v121_v29 = vrot.slane %v114_v27, %v120_v25 }
 0x125   :  { %v122_v30 = vcombine.high %v121_v29, %v121_v29 }
 0x127   :  { %v129_v31 = vrot.slane %v122_v30, %v120_v25 }
 0x129   :  { %v130_v33 = vcombine.high %v129_v31, %v129_v31 }
 0x12b   :  { %v132_v35 = vmul.f32 %v130_v33, %v112_v32 }
 0x12d   :  { %v137_v36 = vrot.slane %v132_v35, %v136_v34 }
 0x12f   :  { %vm139_vm2 = vcmp.lt.f32.partialorder %v105_v23, %v137_v36  ;;  %vm140_vm3 = vcmp.lt.f32.partialorder %v108_v26, %v137_v36 }
 0x130   :  { %v141_v38 = vsel %vm139_vm2, 1, %v276_v37  ;;  %v142_v39 = vsel %vm140_vm3, 1, %v276_v37 }
 0x131   :  { %v143_v40 = vadd.s32 %v142_v39, %v141_v38 }
 0x133   :  { %v144_v41 = vrot.slane %v143_v40, 4 }
 0x135   :  { %v145_v42 = vadd.s32 %v144_v41, %v143_v40 }
 0x137   :  { %v146_v43 = vrot.slane %v145_v42, 2 }
 0x139   :  { %v147_v44 = vadd.s32 %v146_v43, %v145_v42 }
 0x13b   :  { %v148_v45 = vrot.slane %v147_v44, 1 }
 0x13d   :  { %v149_v46 = vadd.s32 %v148_v45, %v147_v44 }
 0x13f   :  { %vm150_vm4 = vcmp.lt.s32.totalorder %v149_v46, 15 }
 0x140   :  { %v151_v47 = vsel %vm150_vm4, %v149_v46, 15 }
 0x141   :  { %152 = vst [vmem:[#allocation7] sm:$0x1] %v151_v47 }
 0x142   :  { %250 = shalt.err (!%p247_p6)
}
 0x143   :  { %s251_s18 = scalar_lea.hbm %s340_s3, 16 }
 0x144   :  { %p252_p7 = scmp.ne.s32.totalorder %s340_s3, %s251_s18  ;;  %p255_p8 = scmp.lt.u32.totalorder %s251_s18, %s340_s3 }
 0x146   :  { %p257_p9 = pnand %p255_p8, %p252_p7 }
 0x148   :  { %260 = shalt.err (!%p257_p9)
}
 0x149   :  { %162 = dma.vmem_to_hbm [thread:$0]  %s160_s14, 16, %s340_s3, [#allocation4]  }
 0x14a   :  { %265 = dma.done.wait [#allocation4], 16  }
 0x14b   :  { %266 = vsyncadd [#allocation4], 4294967280 }
 0x14c   :  { %166 = vsyncpa [#allocation3], 1 }
 0x14d   :  { %167 = vsyncpa [#allocation6], 1 }
 0x14e   :  { %168 = vsyncpa [#allocation4], 1 }

</bundles_post_ra>
